<compile_context>
chip_gen: v6e
topology: v6e:2x2x1
jax: 0.10.0
libtpu: 0.0.40
codegen_flags: <defaults>
</compile_context>

<pallas_src>
import functools

import jax
import jax.numpy as jnp
from jax import lax
from jax.experimental import pallas as pl
from jax.experimental.pallas import tpu as pltpu


def _round_up(x, m):
    return ((x + m - 1) // m) * m


def _vmem_capacity_bytes():
    """Physical VMEM capacity; conservative (v7x, 64 MiB) fallback."""
    try:
        info = pltpu.get_tpu_info()
        cap = getattr(info, "vmem_capacity_bytes", None)
        if cap:
            return int(cap)
    except Exception:
        pass
    return 64 * 1024 * 1024


def _focal_loss_kernel(*refs, gamma, n_total, block_rows, use_alpha, mask_tail):
    if use_alpha:
        logits_ref, targets_ref, alpha_ref, out_ref = refs
    else:
        logits_ref, targets_ref, out_ref = refs
        alpha_ref = None

    x = logits_ref[...].astype(jnp.float32)                 # (TN, C)
    t = targets_ref[...]                                     # (TN, 1) int32

    # Numerically stable log-softmax pieces.
    m = jnp.max(x, axis=-1, keepdims=True)                   # (TN, 1)
    z = x - m                                                 # (TN, C), <= 0
    ez = jnp.exp(z)                                           # (TN, C)
    lse = jnp.log(jnp.sum(ez, axis=-1, keepdims=True))        # (TN, 1)

    # Gather z[target] with a (1,C) iota + single select (no f32 one-hot).
    cls_row = lax.broadcasted_iota(jnp.int32, (1, x.shape[-1]), 1)   # (1, C)
    z_t = jnp.sum(jnp.where(cls_row == t, z, 0.0), axis=-1, keepdims=True)

    ce = lse - z_t                                            # per-sample CE, >= 0
    pt = jnp.exp(-ce)                                         # exp(z_t - lse), (TN,1)

    one_minus_pt = jnp.maximum(1.0 - pt, 0.0)                 # rounding safety
    if float(gamma) == int(gamma) and gamma >= 0:
        # Integer power -> plain VPU multiplies (gamma=2 default).
        w = jnp.ones_like(one_minus_pt)
        for _ in range(int(gamma)):
            w = w * one_minus_pt
    else:
        w = one_minus_pt ** gamma
    loss = w * ce                                             # (TN, 1)

    if use_alpha:
        loss = alpha_ref[...] * loss                          # (TN, 1), pre-gathered

    if mask_tail:
        # Only emitted when N % tile != 0; tiny (TN,1) iota/compare/select.
        rows = pl.program_id(0) * block_rows + lax.broadcasted_iota(
            jnp.int32, loss.shape, 0)
        loss = jnp.where(rows < n_total, loss, 0.0)

    s = jnp.sum(loss)
    # Lane-dense, (8,128)-aligned per-tile output block -> unmasked stores.
    out_ref[...] = jnp.full(out_ref.shape, s, dtype=jnp.float32)


def focal_loss(logits, targets, gamma=2, alpha=None):
    """JAX/Pallas equivalent of the PyTorch FocalLoss.forward (mean reduction)."""
    n, c = logits.shape
    targets2d = targets.astype(jnp.int32).reshape(n, 1)
    use_alpha = alpha is not None

    in_itemsize = jnp.dtype(logits.dtype).itemsize
    vmem_cap = _vmem_capacity_bytes()

    # Audited per-row VMEM footprint:
    #   - logits tile, double-buffered
    #   - (tn,1) int32 targets block, lane-padded to 128 lanes, double-buffered
    #   - ~5x f32 (tn,C) intermediates (x, z, ez, select result, slack)
    #   - optional (tn,1) f32 alpha block, lane-padded, double-buffered
    bytes_per_row = (
        2 * c * in_itemsize
        + 2 * 128 * 4
        + 5 * c * 4
        + (2 * 128 * 4 if use_alpha else 0)
    )
    budget = vmem_cap // 2  # leave half of VMEM for the compiler / pipelining
    max_rows = max(8, (budget // bytes_per_row) // 8 * 8)

    if n > 8:
        # At least two tiles so the "parallel" grid axis can shard across the
        # two TensorCores on v7x; rows per tile stay a multiple of 8.
        tn = min(max_rows, _round_up(pl.cdiv(n, 2), 8))
    else:
        tn = n  # single full-array tile
    num_tiles = pl.cdiv(n, tn)
    mask_tail = (n % tn) != 0

    in_specs = [
        pl.BlockSpec((tn, c), lambda i: (i, 0)),
        pl.BlockSpec((tn, 1), lambda i: (i, 0)),
    ]
    args = [logits, targets2d]
    if use_alpha:
        alpha_t = jnp.asarray(alpha, jnp.float32)[targets2d[:, 0]].reshape(n, 1)
        in_specs.append(pl.BlockSpec((tn, 1), lambda i: (i, 0)))
        args.append(alpha_t)

    kernel = functools.partial(
        _focal_loss_kernel,
        gamma=float(gamma),
        n_total=n,
        block_rows=tn,
        use_alpha=use_alpha,
        mask_tail=mask_tail,
    )

    working = tn * bytes_per_row + (1 << 20)
    vmem_limit = int(max(32 << 20, min(vmem_cap - (8 << 20), 2 * working)))

    partials = pl.pallas_call(
        kernel,
        out_shape=jax.ShapeDtypeStruct((num_tiles, 8, 128), jnp.float32),
        grid=(num_tiles,),
        in_specs=in_specs,
        out_specs=pl.BlockSpec((1, 8, 128), lambda i: (i, 0, 0)),
        compiler_params=pltpu.CompilerParams(
            dimension_semantics=("parallel",),
            vmem_limit_bytes=vmem_limit,
        ),
    )(*args)

    return jnp.sum(partials[:, 0, 0]) / jnp.float32(n)


def _focal_loss_ref(logits, targets, gamma=2, alpha=None):
    """Pure-JAX reference (mirrors the PyTorch code)."""
    logp = jax.nn.log_softmax(logits.astype(jnp.float32), axis=-1)
    ce = -jnp.take_along_axis(logp, targets[:, None].astype(jnp.int32), axis=-1)[:, 0]
    pt = jnp.exp(-ce)
    loss = (1.0 - pt) ** gamma * ce
    if alpha is not None:
        loss = jnp.asarray(alpha, jnp.float32)[targets] * loss
    return jnp.mean(loss)


if __name__ == "__main__":
    key = jax.random.PRNGKey(0)
    k1, k2, k3, k4, k5 = jax.random.split(key, 5)

    # Case 1: f32 logits, gamma=2, no alpha (2 even parallel tiles).
    N, C = 32, 32
    logits = jax.random.normal(k1, (N, C), dtype=jnp.float32)
    targets = jax.random.randint(k2, (N,), 0, C, dtype=jnp.int32)
    out = jax.block_until_ready(focal_loss(logits, targets, gamma=2, alpha=None))
    ref = _focal_loss_ref(logits, targets, gamma=2, alpha=None)
    assert jnp.allclose(out, ref, atol=1e-5, rtol=1e-4), (out, ref)

    # Case 2: alpha-weighted variant (alpha gathered in the wrapper).
    alpha = jax.random.uniform(k3, (C,), dtype=jnp.float32) + 0.5
    out_a = jax.block_until_ready(focal_loss(logits, targets, gamma=2, alpha=alpha))
    ref_a = _focal_loss_ref(logits, targets, gamma=2, alpha=alpha)
    assert jnp.allclose(out_a, ref_a, atol=1e-5, rtol=1e-4), (out_a, ref_a)

    # Case 3: bf16 logits with a ragged tail tile (exercises the mask path).
    N2, C2 = 20, 48
    logits2 = jax.random.normal(k4, (N2, C2), dtype=jnp.bfloat16)
    targets2 = jax.random.randint(k5, (N2,), 0, C2, dtype=jnp.int32)
    out_b = jax.block_until_ready(focal_loss(logits2, targets2, gamma=2, alpha=None))
    ref_b = _focal_loss_ref(logits2, targets2, gamma=2, alpha=None)
    assert jnp.allclose(out_b, ref_b, atol=1e-4, rtol=1e-3), (out_b, ref_b)

    print("KERNEL_OK")
</pallas_src>

<mosaic_0001>
module attributes {stable_mosaic.version = 11 : i64} {
  func.func @_focal_loss_kernel(%arg0: i32, %arg1: memref<16x32xf32, #tpu.memory_space<vmem>>, %arg2: memref<16x1xi32, #tpu.memory_space<vmem>>, %arg3: memref<1x8x128xf32, #tpu.memory_space<vmem>>) attributes {dimension_semantics = [#tpu.dimension_semantics<parallel>], iteration_bounds = array<i64: 2>, scalar_prefetch = 0 : i64, scratch_operands = 0 : i64, tpu.core_type = #tpu.core_type<tc>, window_params = [{transform_indices = @transform_0, window_bounds = array<i64: 16, 32>}, {transform_indices = @transform_1, window_bounds = array<i64: 16, 1>}, {transform_indices = @transform_2, window_bounds = array<i64: 1, 8, 128>}]} {
    %c0 = arith.constant 0 : index
    %c0_0 = arith.constant 0 : index
    %0 = vector.load %arg1[%c0, %c0_0] : memref<16x32xf32, #tpu.memory_space<vmem>>, vector<16x32xf32>
    %c0_1 = arith.constant 0 : index
    %c0_2 = arith.constant 0 : index
    %1 = vector.load %arg2[%c0_1, %c0_2] : memref<16x1xi32, #tpu.memory_space<vmem>>, vector<16x1xi32>
    %cst = arith.constant dense<0xFF800000> : vector<16xf32>
    %2 = vector.multi_reduction <maximumf>, %0, %cst [1] : vector<16x32xf32> to vector<16xf32>
    %3 = vector.shape_cast %2 : vector<16xf32> to vector<16x1xf32>
    %4 = vector.broadcast %3 : vector<16x1xf32> to vector<16x32xf32>
    %5 = arith.subf %0, %4 : vector<16x32xf32>
    %6 = math.exp %5 : vector<16x32xf32>
    %cst_3 = arith.constant dense<0.000000e+00> : vector<16xf32>
    %7 = vector.multi_reduction <add>, %6, %cst_3 [1] : vector<16x32xf32> to vector<16xf32>
    %8 = vector.shape_cast %7 : vector<16xf32> to vector<16x1xf32>
    %9 = math.log %8 : vector<16x1xf32>
    %10 = tpu.iota {dimensions = array<i32: 1>} : vector<1x32xi32>
    %11 = vector.broadcast %10 : vector<1x32xi32> to vector<16x32xi32>
    %12 = vector.broadcast %1 : vector<16x1xi32> to vector<16x32xi32>
    %13 = arith.cmpi eq, %11, %12 : vector<16x32xi32>
    %cst_4 = arith.constant 0.000000e+00 : f32
    %14 = vector.broadcast %cst_4 : f32 to vector<16x32xf32>
    %15 = arith.select %13, %5, %14 : vector<16x32xi1>, vector<16x32xf32>
    %cst_5 = arith.constant dense<0.000000e+00> : vector<16xf32>
    %16 = vector.multi_reduction <add>, %15, %cst_5 [1] : vector<16x32xf32> to vector<16xf32>
    %17 = vector.shape_cast %16 : vector<16xf32> to vector<16x1xf32>
    %18 = arith.subf %9, %17 : vector<16x1xf32>
    %cst_6 = arith.constant 0.000000e+00 : f32
    %19 = vector.broadcast %cst_6 : f32 to vector<16x1xf32>
    %20 = arith.subf %19, %18 : vector<16x1xf32>
    %21 = math.exp %20 : vector<16x1xf32>
    %cst_7 = arith.constant 1.000000e+00 : f32
    %22 = vector.broadcast %cst_7 : f32 to vector<16x1xf32>
    %23 = arith.subf %22, %21 : vector<16x1xf32>
    %cst_8 = arith.constant 0.000000e+00 : f32
    %24 = vector.broadcast %cst_8 : f32 to vector<16x1xf32>
    %25 = arith.maximumf %23, %24 : vector<16x1xf32>
    %cst_9 = arith.constant 1.000000e+00 : f32
    %26 = vector.broadcast %cst_9 : f32 to vector<16x1xf32>
    %27 = arith.mulf %26, %25 : vector<16x1xf32>
    %28 = arith.mulf %27, %25 : vector<16x1xf32>
    %29 = arith.mulf %28, %18 : vector<16x1xf32>
    %30 = vector.shape_cast %29 : vector<16x1xf32> to vector<1x16x1xf32>
    %cst_10 = arith.constant dense<0.000000e+00> : vector<1xf32>
    %31 = vector.multi_reduction <add>, %30, %cst_10 [1, 2] : vector<1x16x1xf32> to vector<1xf32>
    %32 = vector.shape_cast %31 : vector<1xf32> to vector<1x1x1xf32>
    %33 = vector.extract %32[0, 0, 0] : f32 from vector<1x1x1xf32>
    %34 = vector.broadcast %33 : f32 to vector<1x8x128xf32>
    %c0_11 = arith.constant 0 : index
    %c0_12 = arith.constant 0 : index
    %c0_13 = arith.constant 0 : index
    %35 = vector.load %arg3[%c0_11, %c0_12, %c0_13] : memref<1x8x128xf32, #tpu.memory_space<vmem>>, vector<1x8x128xf32>
    tpu.vector_store %arg3[%c0_11, %c0_12, %c0_13], %34 {strides = array<i32>} : memref<1x8x128xf32, #tpu.memory_space<vmem>>, vector<1x8x128xf32>,
    return
  }
  func.func @transform_0(%arg0: i32) -> (i32, i32) {
    %c0_i32 = arith.constant 0 : i32
    %c0_i32_0 = arith.constant 0 : i32
    return %arg0, %c0_i32 : i32, i32
  }
  func.func @transform_1(%arg0: i32) -> (i32, i32) {
    %c0_i32 = arith.constant 0 : i32
    %c0_i32_0 = arith.constant 0 : i32
    return %arg0, %c0_i32 : i32, i32
  }
  func.func @transform_2(%arg0: i32) -> (i32, i32, i32) {
    %c0_i32 = arith.constant 0 : i32
    %c0_i32_0 = arith.constant 0 : i32
    %c0_i32_1 = arith.constant 0 : i32
    return %arg0, %c0_i32, %c0_i32_0 : i32, i32, i32
  }
}

</mosaic_0001>

<bundles_post_ra>
// kernel: tpu_custom_call.1
= control target key start
LH: loop header
LB: loop body
LE: loop exit
PB: predicated region body
PF: predicated region fallthrough
CT: control target
= control target key end

     0   :  { %7 = vsyncpa [#allocation3], 0  ;;  %s576_s0 = inlined_call_operand.vmem [shape: f32[32,32], index: 0, kind: input, shape index: {}]   ;;  %s577_s1 = inlined_call_operand.vmem [shape: s32[32,1], index: 1, kind: input, shape index: {}]   ;;  %s578_s2 = inlined_call_operand.hbm [shape: f32[2,8,128], index: 2, kind: output, shape index: {}]  }
   0x1   :  { %9 = vsyncpa [#allocation3 + $0x1], 0  ;;  %s475_s9 = smov 0   ;;  %s477_s10 = smov 0  }
   0x2   :  { %s479_s11 = smov 0   ;;  %s481_s12 = smov 0  }
   0x3 LB: > { %s496_s13 = sadd.s32 4294967295, %s456_s12   ;;  %s327_s14 = sadd.s32 4294967294, %s456_s12   ;;  %s456_s12 = sphi %s481_s12, %s584_s12   ;;  %s452_s11 = sphi %s479_s11, %s583_s11   ;;  %s448_s10 = sphi %s477_s10, %s582_s10   ;;  %s444_s9 = sphi %s475_s9, %s581_s9  }
   0x4   : > { %s500_s15 = sadd.s32 1, %s456_s12   ;;  %s74_s16 = sadd.s32 1, %s452_s11 }
   0x5   : > { %s71_s17 = ssub.s32 %s456_s12, %s500_s15  ;;  %p84_p0 = scmp.ne.s32.totalorder %s452_s11, %s448_s10 }
   0x6   : > { %p72_p1 = scmp.eq.s32.totalorder %s71_s17, 0  ;;  %p85_p2 = scmp.eq.s32.totalorder %s496_s13, 1 }
   0x7   : > { %p90_p3 = scmp.ne.s32.totalorder %s448_s10, %s444_s9  ;;  %p91_p4 = scmp.eq.s32.totalorder %s327_s14, 1 }
   0x8   : > { %s511_s18 = scalar_select %p72_p1, %s452_s11, %s74_s16  }
   0x9   : > { %p513_p5 = por %p85_p2, %p84_p0  ;;  %p517_p6 = por %p91_p4, %p90_p3 }
   0xa   : > { %p330_p7 = scmp.ge.s32.totalorder %s456_s12, 1  ;;  %p127_p8 = scmp.lt.s32.totalorder %s456_s12, 3 }
   0xc   : > { %p128_p9 = pnand %p330_p7, %p127_p8 }
   0xd   : > { %s332_s21 = sshll.u32 (!%p128_p9), %s496_s13, 1  ;;  %s151_s29 = sand.u32 (!%p128_p9), 1, %s448_s10  }
   0xe   : > { %131 = sbr.rel (%p128_p9) target bundleno = 584 (0x248), region = 28  ;;  %p155_p10 = scmp.lt.s32.totalorder (!%p128_p9), %s332_s21, 3 }
   0xf   : > { %s331_s30 = sshll.u32 (!%p128_p9), %s151_s29, 3  ;;  %s337_s5 = sshll.u32 (!%p128_p9), %s496_s13, 7 }
  0x10   : > { %s153_s3 = scalar_lea.vmem (!%p128_p9), [#allocation2], %s331_s30  ;;  %s254_s14 = scalar_lea.hbm (!%p128_p9), %s578_s2, %s337_s5 }
  0x11   : > { %s256_s4 = sshll.u32 (!%p128_p9), %s153_s3, 4  ;;  %s243_s16 = scalar_lea.sflag (!%p128_p9), [#allocation3], %s151_s29  ;;  %s538_s4 = int_to_ptr.vmem [resolvable:$true] %s256_s4 }
  0x12   : > { %s396_s17 = scalar_lea.vmem (!%p128_p9), %s538_s4, 128 }
  0x13   : > { %v458_v0 = vmov 0   ;;  %s586_s21 = smov (!%p155_p10, %s332_s21), 3  ;;  %vm170_vm0 = vcmask 261120   ;;  %v193_v13 = vlaneseq  ;;  %vm227_vm3 = vcmask 7168   ;;  %p397_p11 = scmp.ne.s32.totalorder %s538_s4, %s396_s17 }
  0x14   : > { %382 = vset.pattern.permute.xlu1 %v458_v0  ;;  %383 = vset.pattern.permute.xlu0 %v458_v0  ;;  %s333_s22 = sshll.u32 %s586_s21, 3  ;;  %s459_s21 = smov [#allocation2]  }
  0x15   : > { %s158_s25 = scalar_lea.vmem %s576_s0, %s333_s22  ;;  %s164_s28 = scalar_lea.vmem %s577_s1, %s333_s22  ;;  %v194_v15 = vand.u32 127, %v193_v13 }
  0x16   : > { %v166_v1 = vld [vmem:[%s158_s25] sm:$0xff]  ;;  %v167_v2 = vld [vmem:[%s158_s25 + $0x8] sm:$0xff]  ;;  %p398_p12 = pnand %p397_p11, %p513_p5  ;;  %s400_s13 = sshll.u32 %s459_s21, 4  ;;  %s401_s13 = int_to_ptr.vmem [resolvable:$false] %s400_s13 }
  0x17   : > { %v168_v3 = vld [vmem:[%s164_s28] sm:$0xff]  ;;  %v171_v4 = vsel %vm170_vm0, %v166_v1, -inf  ;;  %v169_v5 = vld [vmem:[%s164_s28 + $0x8] sm:$0xff]  ;;  %v174_v6 = vsel %vm170_vm0, %v167_v2, -inf  ;;  %s402_s22 = scalar_lea.vmem %s401_s13, 256  ;;  %p403_p0 = scmp.lt.s32.totalorder %s538_s4, %s401_s13 }
  0x18   : > { %196 = vperm.xlu1 %382, %v168_v3   ;;  %172 = vmax.xlane.f32.xlu0 %v171_v4  ;;  %p399_p13 = pneg %p398_p12  ;;  %p404_p1 = scmp.lt.s32.totalorder %s402_s22, %s396_s17 }
  0x1a   : > { %p405_p2 = por %p404_p1, %p403_p0 }
  0x1c   : > { %199 = vperm.xlu1 %382, %v169_v5   ;;  %175 = vmax.xlane.f32.xlu0 %v174_v6  ;;  %p406_p3 = pnand %p405_p2, %p399_p13 }
  0x93   : > { %v197_v14 = vpop.permute.xlu1 %196 }
  0x94   : > { %vm201_vm1 = vcmp.eq.s32.totalorder %v194_v15, %v197_v14 }
  0x97   : > { %v200_v17 = vpop.permute.xlu1 %199 }
  0x98   : > { %vm202_vm2 = vcmp.eq.s32.totalorder %v194_v15, %v200_v17 }
  0xa1   : > { %v173_v7 = vpop.xlane.xlu0 %172 }
  0xa2   : > { %v177_v8 = vsub.f32 %v166_v1, %v173_v7 }
  0xa4   : > { %v179_v9 = vmul.f32 1.442695, %v177_v8  ;;  %v203_v19 = vsel %vm201_vm1, %v177_v8, 0.0 }
  0xa5   : > { %v176_v10 = vpop.xlane.xlu0 %175  ;;  %v205_v21 = vsel %vm170_vm0, %v203_v19, 0.0 }
  0xa6   : > { %384 = vpow2.f32 %v179_v9  ;;  %v178_v11 = vsub.f32 %v167_v2, %v176_v10 }
  0xa8   : > { %v181_v12 = vmul.f32 1.442695, %v178_v11  ;;  %v204_v23 = vsel %vm202_vm2, %v178_v11, 0.0 }
  0xa9   : > { %v208_v24 = vsel %vm170_vm0, %v204_v23, 0.0 }
  0xaa   : > { %386 = vpow2.f32 %v181_v12 }
  0xb3   : > { %v385_v16 = vpop.eup %384 }
  0xb4   : > { %v183_v18 = vsel %vm170_vm0, %v385_v16, 0.0 }
  0xb5   : > { %184 = vadd.xlane.f32.xlu0 %v183_v18 }
  0xb7   : > { %v387_v20 = vpop.eup %386 }
  0xb8   : > { %v186_v22 = vsel %vm170_vm0, %v387_v20, 0.0 }
  0xb9   : > { %206 = vadd.xlane.f32.xlu0 %v205_v21  ;;  %187 = vadd.xlane.f32.xlu1 %v186_v22 }
  0xbd   : > { %209 = vadd.xlane.f32.xlu0 %v208_v24 }
 0x13e   : > { %v185_v25 = vpop.xlane.xlu0 %184 }
 0x13f   : > { %388 = vlog2.f32 %v185_v25 }
 0x142   : > { %v188_v26 = vpop.xlane.xlu1 %187  ;;  %v207_v28 = vpop.xlane.xlu0 %206 }
 0x143   : > { %390 = vlog2.f32 %v188_v26 }
 0x146   : > { %v210_v34 = vpop.xlane.xlu0 %209 }
 0x14c   : > { %v389_v27 = vpop.eup %388 }
 0x14d   : > { %v190_v29 = vmul.f32 0.6931472, %v389_v27 }
 0x14f   : > { %v211_v30 = vsub.f32 %v190_v29, %v207_v28 }
 0x150   : > { %v391_v31 = vpop.eup %390 }
 0x151   : > { %v213_v32 = vsub.f32 0.0, %v211_v30  ;;  %v192_v33 = vmul.f32 0.6931472, %v391_v31 }
 0x153   : > { %v215_v35 = vmul.f32 1.442695, %v213_v32  ;;  %v212_v36 = vsub.f32 %v192_v33, %v210_v34 }
 0x155   : > { %392 = vpow2.f32 %v215_v35  ;;  %v214_v37 = vsub.f32 0.0, %v212_v36 }
 0x157   : > { %v217_v38 = vmul.f32 1.442695, %v214_v37 }
 0x159   : > { %394 = vpow2.f32 %v217_v38 }
 0x162   : > { %v393_v39 = vpop.eup %392 }
 0x163   : > { %v219_v40 = vsub.f32 1.0, %v393_v39 }
 0x165   : > { %v221_v41 = vmax.f32 %v219_v40, 0.0 }
 0x166   : > { %v395_v42 = vpop.eup %394 }
 0x167   : > { %v223_v43 = vmul.f32 %v221_v41, %v221_v41  ;;  %v220_v44 = vsub.f32 1.0, %v395_v42 }
 0x169   : > { %v222_v45 = vmax.f32 %v220_v44, 0.0  ;;  %v225_v46 = vmul.f32 %v223_v43, %v211_v30 }
 0x16b   : > { %v224_v47 = vmul.f32 %v222_v45, %v222_v45  ;;  %v228_v49 = vsel %vm227_vm3, %v225_v46, 0.0 }
 0x16d   : > { %v226_v48 = vmul.f32 %v224_v47, %v212_v36 }
 0x16f   : > { %v229_v50 = vsel %vm227_vm3, %v226_v48, 0.0 }
 0x170   : > { %v230_v51 = vadd.f32 %v229_v50, %v228_v49 }
 0x172   : > { %231 = vadd.xlane.f32.xlu0 %v230_v51 }
 0x1fb   : > { %v232_v52 = vpop.xlane.xlu0 %231 }
 0x1fc   : > { %v233_v53 = vrot.slane %v232_v52, 4 }
 0x1fe   : > { %v234_v54 = vadd.f32 %v233_v53, %v232_v52 }
 0x200   : > { %v235_v55 = vrot.slane %v234_v54, 2 }
 0x202   : > { %v236_v56 = vadd.f32 %v235_v55, %v234_v54 }
 0x204   : > { %v237_v57 = vrot.slane %v236_v56, 1 }
 0x206   : > { %v238_v58 = vadd.f32 %v237_v57, %v236_v56 }
 0x208   : > { %340 = vpush %v238_v58 }
 0x239   : > { %s341_s6 = spop %340 }
 0x23a   : > { %v240_v59 = vstv %s341_s6 }
 0x23b   : > { %241 = vst [vmem:[%s153_s3] sm:$0xff] %v240_v59 }
 0x23c   : > { %409 = shalt.err (!%p406_p3)
}
 0x23d   : > { %s410_s23 = scalar_lea.hbm %s254_s14, 128  ;;  %s414_s26 = scalar_lea.hbm %s578_s2, 256 }
 0x23e   : > { %p411_p4 = scmp.ne.s32.totalorder %s254_s14, %s410_s23  ;;  %p415_p9 = scmp.lt.s32.totalorder %s254_s14, %s578_s2 }
 0x23f   : > { %p416_p10 = scmp.lt.s32.totalorder %s414_s26, %s410_s23 }
 0x240   : > { %p412_p7 = pnand %p411_p4, %p513_p5 }
 0x241   : > { %p417_p11 = por %p416_p10, %p415_p9 }
 0x242   : > { %p413_p8 = pneg %p412_p7 }
 0x244   : > { %p418_p12 = pnand %p417_p11, %p413_p8 }
 0x246   : > { %421 = shalt.err (!%p418_p12)
}
 0x247   : > { %342 = dma.vmem_to_hbm [thread:$0]  (%p513_p5), %s538_s4, 128, %s254_s14, %s243_s16  }
 0x248 PF: > { %p348_p13 = scmp.ge.s32.totalorder %s456_s12, 2  ;;  %s268_s29 = sand.u32 1, %s444_s9  }
 0x249   : > { %s269_s30 = scalar_lea.sflag [#allocation3], %s268_s29 }
 0x24a   : > { %p345_p0 = pnand %p348_p13, %p517_p6 }
 0x24c   : > { %p346_p1 = pneg %p345_p0 }
 0x24e   : > { %439 = dma.done.wait (%p346_p1), %s269_s30, 128  }
 0x24f   : > { %441 = vsyncadd (%p346_p1), %s269_s30, 4294967168  ;;  %p12_p2 = scmp.ge.s32.totalorder %s500_s15, 4   ;;  %s581_s9 = smov %s448_s10 }
 0x250   : > { %s582_s10 = smov %s452_s11  ;;  %s583_s11 = smov %s511_s18 }
 0x251   : > { %s584_s12 = smov %s500_s15  ;;  %14 = sbr.rel (!%p12_p2) target bundleno = 3 (0x3), region = 66 }
 0x256   :  { %274 = vsyncpa [#allocation3], 1 }
 0x257   :  { %276 = vsyncpa [#allocation3 + $0x1], 1 }

</bundles_post_ra>
